<compile_context>
chip_gen: v7x
topology: tpu7x:2x2x1
jax: 0.10.0
libtpu: 0.0.40
codegen_flags: <defaults>
</compile_context>

<pallas_src>
import jax
import jax.numpy as jnp
from jax.experimental import pallas as pl
from jax.experimental.pallas import tpu as pltpu


def _normalize_kernel(scale_ref, bias_ref, x_ref, o_ref):
    # Per-row affine: out = x * (1/std) + (-mean/std).  Single VPU FMA per element.
    x = x_ref[...]
    o_ref[...] = (x * scale_ref[...] + bias_ref[...]).astype(o_ref.dtype)


def _round_up(a, b):
    return (a + b - 1) // b * b


def _sublane_pack(dtype):
    # Sublane packing factor: f32 -> 8, bf16/f16 -> 16, int8/fp8 -> 32.
    return max(8, 32 // jnp.dtype(dtype).itemsize)


def _per_buffer_target_bytes():
    # Generation-aware per-buffer tile target:
    #   v7x (64 MiB VMEM, ~3.2 TB/s HBM): ~4 MiB to amortize the ~0.35us/step cost.
    #   v5e/v6e (128 MiB VMEM): ~2 MiB already reaches >=85% of HBM roofline.
    try:
        vmem = pltpu.get_tpu_info().vmem_capacity_bytes
    except Exception:
        vmem = None
    if vmem is not None and vmem <= (64 << 20):
        return 4 << 20
    return 2 << 20


def _choose_tiles(rows, L, in_dtype, out_dtype, target_bytes, min_steps=4):
    itemsize = max(jnp.dtype(in_dtype).itemsize, jnp.dtype(out_dtype).itemsize)
    pack = max(_sublane_pack(in_dtype), _sublane_pack(out_dtype))

    # Lane (last-dim) tile: lane-dense multiple of 128, or the full extent.
    if L <= 128:
        TL = L
    else:
        tl_budget = max(128, (target_bytes // (pack * itemsize)) // 128 * 128)
        TL = min(tl_budget, _round_up(L, 128))

    # Row (sublane) tile: full extent if small, else a multiple of the pack,
    # grown to use the remaining per-buffer budget.
    if rows <= pack:
        TM = rows
    else:
        tm_budget = max(pack, (target_bytes // (TL * itemsize)) // pack * pack)
        TM = min(tm_budget, _round_up(rows, pack))

    # v7x megacore: keep enough grid steps for both TensorCores (harmless on
    # v5e/v6e).  Never shrink the lane tile below 512 (roofline fraction drops).
    def steps(tm, tl):
        return pl.cdiv(rows, tm) * pl.cdiv(L, tl)

    while steps(TM, TL) < min_steps and TL > 512:
        TL = max(512, _round_up(TL // 2, 128))
    while steps(TM, TL) < min_steps and TM > pack:
        TM = max(pack, _round_up(TM // 2, pack))

    return TM, TL, pack


def normalize(x, mean, std):
    """Pallas TPU equivalent of (x - mean.reshape(1,3,1,1)) / std.reshape(1,3,1,1)."""
    N, C, H, W = x.shape
    assert mean.shape == (C,) and std.shape == (C,)

    # Floats keep their dtype; integer inputs promote to f32 (PyTorch semantics:
    # (int - float)/float -> float), avoiding silent truncation.
    if jnp.issubdtype(x.dtype, jnp.floating):
        out_dtype = x.dtype
    else:
        out_dtype = jnp.float32
    param_dtype = out_dtype

    # Collapse N,C onto sublanes and H*W onto lanes (free row-major reshape).
    rows, L = N * C, H * W
    x2 = x.reshape(rows, L)

    # Affine rewrite: (x - mean)/std == x*(1/std) + (-mean/std), tiled per row.
    inv_std = 1.0 / std.astype(jnp.float32)
    scale = jnp.tile(inv_std, N).reshape(rows, 1).astype(param_dtype)
    bias = jnp.tile(-mean.astype(jnp.float32) * inv_std, N).reshape(rows, 1).astype(param_dtype)

    target = _per_buffer_target_bytes()
    TM, TL, pack = _choose_tiles(rows, L, x.dtype, out_dtype, target)
    grid = (pl.cdiv(rows, TM), pl.cdiv(L, TL))

    # Explicit, padding-aware VMEM budget: double-buffered in + out tiles plus
    # the (tiny) scale/bias tiles and compiler-scratch headroom.  32 MiB floor is
    # safe on every generation (raises v5e's 16 MiB default, matches v6e/v7x).
    tm_pad = _round_up(TM, pack)
    tl_pad = _round_up(TL, 128) if TL > 128 else TL
    in_bytes = tm_pad * tl_pad * jnp.dtype(x.dtype).itemsize
    out_bytes = tm_pad * tl_pad * jnp.dtype(out_dtype).itemsize
    sb_bytes = 2 * _round_up(TM, 8) * 128 * jnp.dtype(param_dtype).itemsize
    resident = 2 * (in_bytes + out_bytes + sb_bytes)
    vmem_limit = int(min(64 << 20, max(32 << 20, resident + (4 << 20))))

    grid_spec = pl.GridSpec(
        grid=grid,
        in_specs=[
            pl.BlockSpec((TM, 1), lambda i, l: (i, 0)),   # scale, per-row
            pl.BlockSpec((TM, 1), lambda i, l: (i, 0)),   # bias,  per-row
            pl.BlockSpec((TM, TL), lambda i, l: (i, l)),  # x
        ],
        out_specs=pl.BlockSpec((TM, TL), lambda i, l: (i, l)),
    )

    out = pl.pallas_call(
        _normalize_kernel,
        out_shape=jax.ShapeDtypeStruct((rows, L), out_dtype),
        grid_spec=grid_spec,
        compiler_params=pltpu.CompilerParams(
            dimension_semantics=("parallel", "parallel"),
            vmem_limit_bytes=vmem_limit,
        ),
    )(scale, bias, x2)

    return out.reshape(N, C, H, W)


if __name__ == "__main__":
    # ImageNet-style per-channel mean/std (3 channels, fixed by the module).
    mean = jnp.array([0.485, 0.456, 0.406], dtype=jnp.float32)
    std = jnp.array([0.229, 0.224, 0.225], dtype=jnp.float32)

    key = jax.random.PRNGKey(0)
    x = jax.random.uniform(key, (2, 3, 16, 16), dtype=jnp.float32)

    out = jax.block_until_ready(normalize(x, mean, std))

    # Plain-JAX reference check.
    ref = (x - mean.reshape(1, 3, 1, 1)) / std.reshape(1, 3, 1, 1)
    assert out.shape == ref.shape and out.dtype == ref.dtype
    assert jnp.allclose(out, ref, atol=1e-5, rtol=1e-5)

    print("KERNEL_OK")
</pallas_src>

<mosaic_0001>
module attributes {stable_mosaic.version = 11 : i64} {
  func.func @_normalize_kernel(%arg0: i32, %arg1: i32, %arg2: memref<6x1xf32, #tpu.memory_space<vmem>>, %arg3: memref<6x1xf32, #tpu.memory_space<vmem>>, %arg4: memref<6x256xf32, #tpu.memory_space<vmem>>, %arg5: memref<6x256xf32, #tpu.memory_space<vmem>>) attributes {dimension_semantics = [#tpu.dimension_semantics<parallel>, #tpu.dimension_semantics<parallel>], iteration_bounds = array<i64: 1, 1>, scalar_prefetch = 0 : i64, scratch_operands = 0 : i64, tpu.core_type = #tpu.core_type<tc>, window_params = [{transform_indices = @transform_0, window_bounds = array<i64: 6, 1>}, {transform_indices = @transform_1, window_bounds = array<i64: 6, 1>}, {transform_indices = @transform_2, window_bounds = array<i64: 6, 256>}, {transform_indices = @transform_3, window_bounds = array<i64: 6, 256>}]} {
    %c0 = arith.constant 0 : index
    %c0_0 = arith.constant 0 : index
    %0 = vector.load %arg4[%c0, %c0_0] : memref<6x256xf32, #tpu.memory_space<vmem>>, vector<6x256xf32>
    %c0_1 = arith.constant 0 : index
    %c0_2 = arith.constant 0 : index
    %1 = vector.load %arg2[%c0_1, %c0_2] : memref<6x1xf32, #tpu.memory_space<vmem>>, vector<6x1xf32>
    %2 = vector.broadcast %1 : vector<6x1xf32> to vector<6x256xf32>
    %3 = arith.mulf %0, %2 : vector<6x256xf32>
    %c0_3 = arith.constant 0 : index
    %c0_4 = arith.constant 0 : index
    %4 = vector.load %arg3[%c0_3, %c0_4] : memref<6x1xf32, #tpu.memory_space<vmem>>, vector<6x1xf32>
    %5 = vector.broadcast %4 : vector<6x1xf32> to vector<6x256xf32>
    %6 = arith.addf %3, %5 : vector<6x256xf32>
    %c0_5 = arith.constant 0 : index
    %c0_6 = arith.constant 0 : index
    %7 = vector.load %arg5[%c0_5, %c0_6] : memref<6x256xf32, #tpu.memory_space<vmem>>, vector<6x256xf32>
    tpu.vector_store %arg5[%c0_5, %c0_6], %6 {strides = array<i32>} : memref<6x256xf32, #tpu.memory_space<vmem>>, vector<6x256xf32>,
    return
  }
  func.func @transform_0(%arg0: i32, %arg1: i32) -> (i32, i32) {
    %c0_i32 = arith.constant 0 : i32
    %c0_i32_0 = arith.constant 0 : i32
    return %arg0, %c0_i32 : i32, i32
  }
  func.func @transform_1(%arg0: i32, %arg1: i32) -> (i32, i32) {
    %c0_i32 = arith.constant 0 : i32
    %c0_i32_0 = arith.constant 0 : i32
    return %arg0, %c0_i32 : i32, i32
  }
  func.func @transform_2(%arg0: i32, %arg1: i32) -> (i32, i32) {
    %c0_i32 = arith.constant 0 : i32
    return %arg0, %arg1 : i32, i32
  }
  func.func @transform_3(%arg0: i32, %arg1: i32) -> (i32, i32) {
    %c0_i32 = arith.constant 0 : i32
    return %arg0, %arg1 : i32, i32
  }
}

</mosaic_0001>

<bundles_post_ra>
// kernel: tpu_custom_call.1
= control target key start
LH: loop header
LB: loop body
LE: loop exit
PB: predicated region body
PF: predicated region fallthrough
CT: control target
= control target key end

     0   :  { %v76_v1 = vmov 0   ;;  %s122_s0 = inlined_call_operand.vmem [shape: f32[6,1], index: 0, kind: input, shape index: {}]   ;;  %s123_s1 = inlined_call_operand.vmem [shape: f32[6,1], index: 1, kind: input, shape index: {}]   ;;  %s124_s2 = inlined_call_operand.vmem [shape: f32[6,256], index: 2, kind: input, shape index: {}]   ;;  %s125_s3 = inlined_call_operand.hbm [shape: f32[6,256], index: 3, kind: output, shape index: {}]  }
   0x1   :  { %v17_v0 = vld [vmem:[%s122_s0] sm:$0x3f]  ;;  %51 = vset.pattern.permute.xlu0 %v76_v1 }
   0x2   :  { %8 = vsyncpa [#allocation3], 0  ;;  %20 = vperm.xlu0 %51, %v17_v0   ;;  %v25_v2 = vld [vmem:[%s123_s1] sm:$0x3f]  ;;  %v16_v5 = vld [vmem:[%s124_s2 + $0x8] sm:$0x3f] }
   0x3   :  { %v15_v4 = vld [vmem:[%s124_s2] sm:$0x3f]  ;;  %s77_s20 = smov [#allocation2]  }
   0x4   :  { %s41_s0 = sshll.u32 %s77_s20, 4  ;;  %s42_s0 = int_to_ptr.vmem [resolvable:$true] %s41_s0 }
   0x5   :  { %s52_s1 = scalar_lea.vmem %s42_s0, 256  ;;  %p57_p1 = scmp.lt.s32.totalorder %s42_s0, %s42_s0 }
   0x6   :  { %28 = vperm.xlu0 %51, %v25_v2   ;;  %p53_p0 = scmp.ne.s32.totalorder %s42_s0, %s52_s1  ;;  %p58_p2 = scmp.lt.s32.totalorder %s52_s1, %s52_s1 }
   0x8   :  { %p59_p3 = por %p58_p2, %p57_p1 }
   0xa   :  { %p60_p4 = pnand %p59_p3, %p53_p0 }
  0x81   :  { %v21_v3 = vpop.permute.xlu0 %20 }
  0x82   :  { %v23_v6 = vmul.f32 %v21_v3, %v15_v4  ;;  %v24_v7 = vmul.f32 %v21_v3, %v16_v5 }
  0x85   :  { %v29_v8 = vpop.permute.xlu0 %28 }
  0x86   :  { %v31_v9 = vadd.f32 %v29_v8, %v23_v6  ;;  %v32_v10 = vadd.f32 %v29_v8, %v24_v7 }
  0x88   :  { %33 = vst [vmem:[#allocation2] sm:$0x3f] %v31_v9  ;;  %34 = vst [vmem:[#allocation2 + $0x8] sm:$0x3f] %v32_v10 }
  0x89   :  { %63 = shalt.err (!%p60_p4)
}
  0x8a   :  { %s64_s2 = scalar_lea.hbm %s125_s3, 256 }
  0x8b   :  { %p65_p5 = scmp.ne.s32.totalorder %s125_s3, %s64_s2  ;;  %p68_p6 = scmp.lt.u32.totalorder %s64_s2, %s125_s3 }
  0x8d   :  { %p70_p7 = pnand %p68_p6, %p65_p5 }
  0x8f   :  { %73 = shalt.err (!%p70_p7)
}
  0x90   :  { %44 = dma.vmem_to_hbm [thread:$0]  %s42_s0, 256, %s125_s3, [#allocation3]  }
  0x91   :  { %74 = dma.done.wait [#allocation3], 256  }
  0x92   :  { %75 = vsyncadd [#allocation3], 4294967040 }
  0x93   :  { %48 = vsyncpa [#allocation3], 1 }

</bundles_post_ra>
